<compile_context>
chip_gen: v7x
topology: tpu7x:2x2x1
jax: 0.10.0
libtpu: 0.0.40
codegen_flags: <defaults>
</compile_context>

<pallas_src>
import functools

import jax
import jax.numpy as jnp
from jax import lax
from jax.experimental import pallas as pl
from jax.experimental.pallas import tpu as pltpu


def _ggnn_kernel(time_step, batch_tile, node_num, dim,
                 nodes_ref, adj_ref, wg_ref, wu_ref, bias_ref, out_ref):
    """One batch tile (rows = Bt*N) per grid step; full time loop inside."""
    Bt, N, D = batch_tile, node_num, dim
    rows = Bt * N

    h0 = nodes_ref[...]                       # (Bt*N, D) f32, row = b*N + n
    adj2 = adj_ref[...]                       # (2N, N)   rows [0,N)=in_matrix, [N,2N)=out_matrix
    wg = wg_ref[...]                          # (2D, 3D)  fused [w3w | w4w | w5w]
    wu = wu_ref[...]                          # (2D, D)   rows [0,D)=w3u, [D,2D)=w5u
    mm_dtype = adj2.dtype                     # MXU operand dtype (bf16 by default)

    wga, wgb = wg[:D, :], wg[D:, :]           # a_in / a_out halves of cat(a_in, a_out)
    wu3, wu5 = wu[:D, :], wu[D:, :]

    # Pre-broadcast the folded biases once: the time loop below is fully
    # unrolled and JAX does not CSE broadcast_in_dim.
    bias = bias_ref[...]                      # (1, 3D) f32: [z | r | h]
    bz = jnp.broadcast_to(bias[:, :D], (rows, D))
    br = jnp.broadcast_to(bias[:, D:2 * D], (rows, D))
    bh = jnp.broadcast_to(bias[:, 2 * D:], (rows, D))

    def dot(a, b):
        return jnp.dot(a.astype(mm_dtype), b.astype(mm_dtype),
                       preferred_element_type=jnp.float32)

    def step(_, h):
        # Adjacency messages, batch element by batch element (shared (2N, N)
        # operand -> exact MAC count, no block-diagonal padding).
        a_ins, a_outs = [], []
        for b in range(Bt):
            ap = dot(adj2, h[b * N:(b + 1) * N, :])       # (2N, D)
            a_ins.append(ap[:N])
            a_outs.append(ap[N:])
        a_in = jnp.concatenate(a_ins, axis=0)             # (rows, D)
        a_out = jnp.concatenate(a_outs, axis=0)           # (rows, D)

        # Fused eq3_w | eq4_w | eq5_w pre-activations with the SHARED weights.
        pre = dot(a_in, wga) + dot(a_out, wgb)            # (rows, 3D)
        u3 = dot(h, wu3)                                  # eq3_u (used for BOTH zv and rv -- torch quirk)

        zv = jax.nn.sigmoid(pre[:, :D] + u3 + bz)
        rv = jax.nn.sigmoid(pre[:, D:2 * D] + u3 + br)
        u5 = dot(rv * h, wu5)                             # eq5_u
        hv = jnp.tanh(pre[:, 2 * D:] + u5 + bh)

        return (1.0 - zv) * h + zv * hv

    # time_step is a static Python int -> fully unrolled loop body.
    out_ref[...] = lax.fori_loop(0, time_step, step, h0, unroll=True)


def _pick_batch_tile(B, N):
    """Default batch tile.

    Prefer two grid steps so the 'parallel' grid axis can shard across the two
    TensorCores of a v7x chip; on 1-TC v5e/v6e the extra grid step only costs
    ~0.35us.  When Bt < B, the row-block height Bt*N must be a multiple of 8.
    """
    if B % 2 == 0 and ((B // 2) * N) % 8 == 0:
        return B // 2
    return B


def ggnn_forward(x, in_matrix, out_matrix, params, time_step,
                 batch_tile=None, matmul_dtype=jnp.bfloat16):
    """x: (B, N*D) or (B, N, D) float32.  Returns (B, N, D) float32.

    matmul_dtype: dtype of the MXU operands (bf16 by default; pass
    jnp.float32 for strict accuracy -- accumulation is always f32).
    """
    N = in_matrix.shape[0]
    D = params["w3u"].shape[0]
    B = x.shape[0]

    # Torch's natural flattened layout (B*N, D): a pure reshape, no relayout
    # (and the output reshape back to (B, N, D) is free too).
    nodes = jnp.reshape(x.astype(jnp.float32), (B * N, D))

    Bt = batch_tile if batch_tile is not None else _pick_batch_tile(B, N)
    assert B % Bt == 0, "batch tile must divide batch size"
    rows = Bt * N
    assert Bt == B or rows % 8 == 0, (
        "Bt*N must be a multiple of 8 (sublane tiling) when Bt < B")

    # Stacked adjacency -> one matmul per batch element yields both messages.
    adj2 = jnp.concatenate([in_matrix, out_matrix], axis=0).astype(matmul_dtype)

    # SHARED gate weights (no batch block-diagonal expansion).
    Wg = jnp.concatenate([params["w3w"], params["w4w"], params["w5w"]],
                         axis=1).astype(matmul_dtype)                    # (2D, 3D)
    Wu = jnp.concatenate([params["w3u"], params["w5u"]],
                         axis=0).astype(matmul_dtype)                    # (2D, D)

    rb = lambda b: jnp.reshape(b.astype(jnp.float32), (1, D))
    bias = jnp.concatenate([
        rb(params["b3w"] + params["b3u"]),
        rb(params["b4w"] + params["b3u"]),   # quirk: fc_eq3_u's bias, not b4u
        rb(params["b5w"] + params["b5u"]),
    ], axis=1)                               # (1, 3D)

    kernel = functools.partial(_ggnn_kernel, time_step, Bt, N, D)

    # Advisory cost estimate so XLA schedules the surrounding glue correctly.
    mm_bytes = jnp.dtype(matmul_dtype).itemsize
    flops_per_step = (
        2 * B * (2 * N) * N * D               # adjacency messages
        + 2 * (B * N) * (2 * D) * (3 * D)     # fused gate linear
        + 2 * 2 * (B * N) * D * D             # eq3_u / eq5_u linears
        + 12 * B * N * D                      # gating elementwise (approx)
    )
    cost = pl.CostEstimate(
        flops=time_step * flops_per_step,
        transcendentals=time_step * 3 * B * N * D,
        bytes_accessed=(2 * 4 * B * N * D
                        + mm_bytes * (2 * N * N + 2 * D * 3 * D + 2 * D * D)
                        + 4 * 3 * D),
    )

    const = lambda t: (0, 0)   # constant-block index map for weights / bias
    flat_out = pl.pallas_call(
        kernel,
        out_shape=jax.ShapeDtypeStruct((B * N, D), jnp.float32),
        grid=(B // Bt,),
        in_specs=[
            # Node-state block: the only operand that changes per grid step.
            pl.BlockSpec((rows, D), lambda t: (t, 0)),
            # Constant operands: single-buffered to halve their VMEM footprint.
            pl.BlockSpec((2 * N, N), const, pipeline_mode=pl.Buffered(1)),
            pl.BlockSpec((2 * D, 3 * D), const, pipeline_mode=pl.Buffered(1)),
            pl.BlockSpec((2 * D, D), const, pipeline_mode=pl.Buffered(1)),
            pl.BlockSpec((1, 3 * D), const, pipeline_mode=pl.Buffered(1)),
        ],
        out_specs=pl.BlockSpec((rows, D), lambda t: (t, 0)),
        compiler_params=pltpu.CompilerParams(
            dimension_semantics=("parallel",),      # batch-tile axis: shards across v7x's 2 TCs
            vmem_limit_bytes=32 * 1024 * 1024),
        cost_estimate=cost,
    )(nodes, adj2, Wg, Wu, bias)

    return jnp.reshape(flat_out, (B, N, D))


def ggnn_reference(x, in_matrix, out_matrix, params, time_step):
    """Pure-JAX reference mirroring the PyTorch forward (incl. the fc_eq3_u quirk)."""
    N = in_matrix.shape[0]
    D = params["w3u"].shape[0]
    B = x.shape[0]
    h = x.reshape(B, N, D).astype(jnp.float32)
    for _ in range(time_step):
        a_in = jnp.einsum("ij,bjd->bid", in_matrix, h)
        a_out = jnp.einsum("ij,bjd->bid", out_matrix, h)
        av = jnp.concatenate([a_in, a_out], axis=2)
        zv = jax.nn.sigmoid(av @ params["w3w"] + params["b3w"]
                            + h @ params["w3u"] + params["b3u"])
        rv = jax.nn.sigmoid(av @ params["w4w"] + params["b4w"]
                            + h @ params["w3u"] + params["b3u"])
        hv = jnp.tanh(av @ params["w5w"] + params["b5w"]
                      + (rv * h) @ params["w5u"] + params["b5u"])
        h = (1.0 - zv) * h + zv * hv
    return h


def init_params(key, input_dim):
    """Deterministic synthetic parameters. Weights stored as (in_dim, out_dim)."""
    D = input_dim
    keys = jax.random.split(key, 12)
    mk_w = lambda k, i, o: (jax.random.normal(k, (i, o), jnp.float32) * 0.1)
    mk_b = lambda k, o: (jax.random.normal(k, (1, o), jnp.float32) * 0.01)
    return {
        "w3w": mk_w(keys[0], 2 * D, D), "b3w": mk_b(keys[1], D),
        "w3u": mk_w(keys[2], D, D),     "b3u": mk_b(keys[3], D),
        "w4w": mk_w(keys[4], 2 * D, D), "b4w": mk_b(keys[5], D),
        "w4u": mk_w(keys[6], D, D),     "b4u": mk_b(keys[7], D),  # dead in forward (torch quirk)
        "w5w": mk_w(keys[8], 2 * D, D), "b5w": mk_b(keys[9], D),
        "w5u": mk_w(keys[10], D, D),    "b5u": mk_b(keys[11], D),
    }


if __name__ == "__main__":
    B, N, D = 2, 8, 32          # batch, node_num, input_dim
    TIME_STEP = 3

    key = jax.random.PRNGKey(0)
    k_x, k_in, k_out, k_p = jax.random.split(key, 4)

    x = jax.random.normal(k_x, (B, N * D), jnp.float32)
    # Adjacency-style matrices (row-normalized random weights, as in SSGRL).
    in_matrix = jax.nn.softmax(jax.random.normal(k_in, (N, N), jnp.float32), axis=1)
    out_matrix = jax.nn.softmax(jax.random.normal(k_out, (N, N), jnp.float32), axis=1)
    params = init_params(k_p, D)

    ref = ggnn_reference(x, in_matrix, out_matrix, params, TIME_STEP)

    # Strict semantics check with f32 MXU operands.
    out_f32 = ggnn_forward(x, in_matrix, out_matrix, params, TIME_STEP,
                           matmul_dtype=jnp.float32)
    out_f32 = jax.block_until_ready(out_f32)
    assert out_f32.shape == (B, N, D)
    assert jnp.allclose(out_f32, ref, atol=1e-5, rtol=1e-5), "f32 mismatch vs reference"

    # Default fast path: bf16 MXU operands, f32 accumulation / gating.
    # Tolerance is loose because bf16 rounding compounds over TIME_STEP steps.
    out = ggnn_forward(x, in_matrix, out_matrix, params, TIME_STEP)
    out = jax.block_until_ready(out)
    assert out.shape == (B, N, D)
    assert jnp.allclose(out, ref, atol=1e-1, rtol=1e-1), "bf16 mismatch vs reference"

    print("KERNEL_OK")
</pallas_src>

<mosaic_0001>
module attributes {stable_mosaic.version = 11 : i64} {
  func.func @_ggnn_kernel(%arg0: i32, %arg1: memref<8x32xf32, #tpu.memory_space<vmem>>, %arg2: memref<16x8xf32, #tpu.memory_space<vmem>>, %arg3: memref<64x96xf32, #tpu.memory_space<vmem>>, %arg4: memref<64x32xf32, #tpu.memory_space<vmem>>, %arg5: memref<1x96xf32, #tpu.memory_space<vmem>>, %arg6: memref<8x32xf32, #tpu.memory_space<vmem>>) attributes {dimension_semantics = [#tpu.dimension_semantics<parallel>], iteration_bounds = array<i64: 2>, scalar_prefetch = 0 : i64, scratch_operands = 0 : i64, tpu.core_type = #tpu.core_type<tc>, window_params = [{transform_indices = @transform_0, window_bounds = array<i64: 8, 32>}, {pipeline_mode = #tpu.pipeline_mode<synchronous>, transform_indices = @transform_1, window_bounds = array<i64: 16, 8>}, {pipeline_mode = #tpu.pipeline_mode<synchronous>, transform_indices = @transform_2, window_bounds = array<i64: 64, 96>}, {pipeline_mode = #tpu.pipeline_mode<synchronous>, transform_indices = @transform_3, window_bounds = array<i64: 64, 32>}, {pipeline_mode = #tpu.pipeline_mode<synchronous>, transform_indices = @transform_4, window_bounds = array<i64: 1, 96>}, {transform_indices = @transform_5, window_bounds = array<i64: 8, 32>}]} {
    %c0 = arith.constant 0 : index
    %c0_0 = arith.constant 0 : index
    %0 = vector.load %arg1[%c0, %c0_0] : memref<8x32xf32, #tpu.memory_space<vmem>>, vector<8x32xf32>
    %c0_1 = arith.constant 0 : index
    %c0_2 = arith.constant 0 : index
    %1 = vector.load %arg2[%c0_1, %c0_2] : memref<16x8xf32, #tpu.memory_space<vmem>>, vector<16x8xf32>
    %c0_3 = arith.constant 0 : index
    %c0_4 = arith.constant 0 : index
    %2 = vector.load %arg3[%c0_3, %c0_4] : memref<64x96xf32, #tpu.memory_space<vmem>>, vector<64x96xf32>
    %c0_5 = arith.constant 0 : index
    %c0_6 = arith.constant 0 : index
    %3 = vector.load %arg4[%c0_5, %c0_6] : memref<64x32xf32, #tpu.memory_space<vmem>>, vector<64x32xf32>
    %4 = vector.extract_strided_slice %2 {offsets = [0, 0], sizes = [32, 96], strides = [1, 1]} : vector<64x96xf32> to vector<32x96xf32>
    %5 = vector.extract_strided_slice %2 {offsets = [32, 0], sizes = [32, 96], strides = [1, 1]} : vector<64x96xf32> to vector<32x96xf32>
    %6 = vector.extract_strided_slice %3 {offsets = [0, 0], sizes = [32, 32], strides = [1, 1]} : vector<64x32xf32> to vector<32x32xf32>
    %7 = vector.extract_strided_slice %3 {offsets = [32, 0], sizes = [32, 32], strides = [1, 1]} : vector<64x32xf32> to vector<32x32xf32>
    %c0_7 = arith.constant 0 : index
    %c0_8 = arith.constant 0 : index
    %8 = vector.load %arg5[%c0_7, %c0_8] : memref<1x96xf32, #tpu.memory_space<vmem>>, vector<1x96xf32>
    %9 = vector.extract_strided_slice %8 {offsets = [0, 0], sizes = [1, 32], strides = [1, 1]} : vector<1x96xf32> to vector<1x32xf32>
    %10 = vector.shape_cast %9 : vector<1x32xf32> to vector<1x32xf32>
    %11 = vector.broadcast %10 : vector<1x32xf32> to vector<8x32xf32>
    %12 = vector.extract_strided_slice %8 {offsets = [0, 32], sizes = [1, 32], strides = [1, 1]} : vector<1x96xf32> to vector<1x32xf32>
    %13 = vector.shape_cast %12 : vector<1x32xf32> to vector<1x32xf32>
    %14 = vector.broadcast %13 : vector<1x32xf32> to vector<8x32xf32>
    %15 = vector.extract_strided_slice %8 {offsets = [0, 64], sizes = [1, 32], strides = [1, 1]} : vector<1x96xf32> to vector<1x32xf32>
    %16 = vector.shape_cast %15 : vector<1x32xf32> to vector<1x32xf32>
    %17 = vector.broadcast %16 : vector<1x32xf32> to vector<8x32xf32>
    %c0_i32 = arith.constant 0 : i32
    %cst = arith.constant dense<0.000000e+00> : vector<16x32xf32>
    %18 = tpu.matmul %1, %0, %cst {dimension_numbers = #tpu.dot_dimension_numbers<[1], [0], [0], [1], [0, 0, 1, 1], [], []>} : vector<16x8xf32>, vector<8x32xf32>, vector<16x32xf32> -> vector<16x32xf32>
    %19 = vector.extract_strided_slice %18 {offsets = [0, 0], sizes = [8, 32], strides = [1, 1]} : vector<16x32xf32> to vector<8x32xf32>
    %20 = vector.extract_strided_slice %18 {offsets = [8, 0], sizes = [8, 32], strides = [1, 1]} : vector<16x32xf32> to vector<8x32xf32>
    %cst_9 = arith.constant dense<0.000000e+00> : vector<8x96xf32>
    %21 = tpu.matmul %19, %4, %cst_9 {dimension_numbers = #tpu.dot_dimension_numbers<[1], [0], [0], [1], [0, 0, 1, 1], [], []>} : vector<8x32xf32>, vector<32x96xf32>, vector<8x96xf32> -> vector<8x96xf32>
    %cst_10 = arith.constant dense<0.000000e+00> : vector<8x96xf32>
    %22 = tpu.matmul %20, %5, %cst_10 {dimension_numbers = #tpu.dot_dimension_numbers<[1], [0], [0], [1], [0, 0, 1, 1], [], []>} : vector<8x32xf32>, vector<32x96xf32>, vector<8x96xf32> -> vector<8x96xf32>
    %23 = arith.addf %21, %22 : vector<8x96xf32>
    %cst_11 = arith.constant dense<0.000000e+00> : vector<8x32xf32>
    %24 = tpu.matmul %0, %6, %cst_11 {dimension_numbers = #tpu.dot_dimension_numbers<[1], [0], [0], [1], [0, 0, 1, 1], [], []>} : vector<8x32xf32>, vector<32x32xf32>, vector<8x32xf32> -> vector<8x32xf32>
    %25 = vector.extract_strided_slice %23 {offsets = [0, 0], sizes = [8, 32], strides = [1, 1]} : vector<8x96xf32> to vector<8x32xf32>
    %26 = arith.addf %25, %24 : vector<8x32xf32>
    %27 = arith.addf %26, %11 : vector<8x32xf32>
    %28 = arith.negf %27 : vector<8x32xf32>
    %29 = math.exp %28 : vector<8x32xf32>
    %cst_12 = arith.constant 1.000000e+00 : f32
    %30 = vector.broadcast %cst_12 : f32 to vector<8x32xf32>
    %31 = arith.addf %30, %29 : vector<8x32xf32>
    %32 = arith.divf %30, %31 : vector<8x32xf32>
    %33 = vector.extract_strided_slice %23 {offsets = [0, 32], sizes = [8, 32], strides = [1, 1]} : vector<8x96xf32> to vector<8x32xf32>
    %34 = arith.addf %33, %24 : vector<8x32xf32>
    %35 = arith.addf %34, %14 : vector<8x32xf32>
    %36 = arith.negf %35 : vector<8x32xf32>
    %37 = math.exp %36 : vector<8x32xf32>
    %cst_13 = arith.constant 1.000000e+00 : f32
    %38 = vector.broadcast %cst_13 : f32 to vector<8x32xf32>
    %39 = arith.addf %38, %37 : vector<8x32xf32>
    %40 = arith.divf %38, %39 : vector<8x32xf32>
    %41 = arith.mulf %40, %0 : vector<8x32xf32>
    %cst_14 = arith.constant dense<0.000000e+00> : vector<8x32xf32>
    %42 = tpu.matmul %41, %7, %cst_14 {dimension_numbers = #tpu.dot_dimension_numbers<[1], [0], [0], [1], [0, 0, 1, 1], [], []>} : vector<8x32xf32>, vector<32x32xf32>, vector<8x32xf32> -> vector<8x32xf32>
    %43 = vector.extract_strided_slice %23 {offsets = [0, 64], sizes = [8, 32], strides = [1, 1]} : vector<8x96xf32> to vector<8x32xf32>
    %44 = arith.addf %43, %42 : vector<8x32xf32>
    %45 = arith.addf %44, %17 : vector<8x32xf32>
    %46 = math.tanh %45 : vector<8x32xf32>
    %cst_15 = arith.constant 1.000000e+00 : f32
    %47 = vector.broadcast %cst_15 : f32 to vector<8x32xf32>
    %48 = arith.subf %47, %32 : vector<8x32xf32>
    %49 = arith.mulf %48, %0 : vector<8x32xf32>
    %50 = arith.mulf %32, %46 : vector<8x32xf32>
    %51 = arith.addf %49, %50 : vector<8x32xf32>
    %c1_i32 = arith.constant 1 : i32
    %cst_16 = arith.constant dense<0.000000e+00> : vector<16x32xf32>
    %52 = tpu.matmul %1, %51, %cst_16 {dimension_numbers = #tpu.dot_dimension_numbers<[1], [0], [0], [1], [0, 0, 1, 1], [], []>} : vector<16x8xf32>, vector<8x32xf32>, vector<16x32xf32> -> vector<16x32xf32>
    %53 = vector.extract_strided_slice %52 {offsets = [0, 0], sizes = [8, 32], strides = [1, 1]} : vector<16x32xf32> to vector<8x32xf32>
    %54 = vector.extract_strided_slice %52 {offsets = [8, 0], sizes = [8, 32], strides = [1, 1]} : vector<16x32xf32> to vector<8x32xf32>
    %cst_17 = arith.constant dense<0.000000e+00> : vector<8x96xf32>
    %55 = tpu.matmul %53, %4, %cst_17 {dimension_numbers = #tpu.dot_dimension_numbers<[1], [0], [0], [1], [0, 0, 1, 1], [], []>} : vector<8x32xf32>, vector<32x96xf32>, vector<8x96xf32> -> vector<8x96xf32>
    %cst_18 = arith.constant dense<0.000000e+00> : vector<8x96xf32>
    %56 = tpu.matmul %54, %5, %cst_18 {dimension_numbers = #tpu.dot_dimension_numbers<[1], [0], [0], [1], [0, 0, 1, 1], [], []>} : vector<8x32xf32>, vector<32x96xf32>, vector<8x96xf32> -> vector<8x96xf32>
    %57 = arith.addf %55, %56 : vector<8x96xf32>
    %cst_19 = arith.constant dense<0.000000e+00> : vector<8x32xf32>
    %58 = tpu.matmul %51, %6, %cst_19 {dimension_numbers = #tpu.dot_dimension_numbers<[1], [0], [0], [1], [0, 0, 1, 1], [], []>} : vector<8x32xf32>, vector<32x32xf32>, vector<8x32xf32> -> vector<8x32xf32>
    %59 = vector.extract_strided_slice %57 {offsets = [0, 0], sizes = [8, 32], strides = [1, 1]} : vector<8x96xf32> to vector<8x32xf32>
    %60 = arith.addf %59, %58 : vector<8x32xf32>
    %61 = arith.addf %60, %11 : vector<8x32xf32>
    %62 = arith.negf %61 : vector<8x32xf32>
    %63 = math.exp %62 : vector<8x32xf32>
    %cst_20 = arith.constant 1.000000e+00 : f32
    %64 = vector.broadcast %cst_20 : f32 to vector<8x32xf32>
    %65 = arith.addf %64, %63 : vector<8x32xf32>
    %66 = arith.divf %64, %65 : vector<8x32xf32>
    %67 = vector.extract_strided_slice %57 {offsets = [0, 32], sizes = [8, 32], strides = [1, 1]} : vector<8x96xf32> to vector<8x32xf32>
    %68 = arith.addf %67, %58 : vector<8x32xf32>
    %69 = arith.addf %68, %14 : vector<8x32xf32>
    %70 = arith.negf %69 : vector<8x32xf32>
    %71 = math.exp %70 : vector<8x32xf32>
    %cst_21 = arith.constant 1.000000e+00 : f32
    %72 = vector.broadcast %cst_21 : f32 to vector<8x32xf32>
    %73 = arith.addf %72, %71 : vector<8x32xf32>
    %74 = arith.divf %72, %73 : vector<8x32xf32>
    %75 = arith.mulf %74, %51 : vector<8x32xf32>
    %cst_22 = arith.constant dense<0.000000e+00> : vector<8x32xf32>
    %76 = tpu.matmul %75, %7, %cst_22 {dimension_numbers = #tpu.dot_dimension_numbers<[1], [0], [0], [1], [0, 0, 1, 1], [], []>} : vector<8x32xf32>, vector<32x32xf32>, vector<8x32xf32> -> vector<8x32xf32>
    %77 = vector.extract_strided_slice %57 {offsets = [0, 64], sizes = [8, 32], strides = [1, 1]} : vector<8x96xf32> to vector<8x32xf32>
    %78 = arith.addf %77, %76 : vector<8x32xf32>
    %79 = arith.addf %78, %17 : vector<8x32xf32>
    %80 = math.tanh %79 : vector<8x32xf32>
    %cst_23 = arith.constant 1.000000e+00 : f32
    %81 = vector.broadcast %cst_23 : f32 to vector<8x32xf32>
    %82 = arith.subf %81, %66 : vector<8x32xf32>
    %83 = arith.mulf %82, %51 : vector<8x32xf32>
    %84 = arith.mulf %66, %80 : vector<8x32xf32>
    %85 = arith.addf %83, %84 : vector<8x32xf32>
    %c2_i32 = arith.constant 2 : i32
    %cst_24 = arith.constant dense<0.000000e+00> : vector<16x32xf32>
    %86 = tpu.matmul %1, %85, %cst_24 {dimension_numbers = #tpu.dot_dimension_numbers<[1], [0], [0], [1], [0, 0, 1, 1], [], []>} : vector<16x8xf32>, vector<8x32xf32>, vector<16x32xf32> -> vector<16x32xf32>
    %87 = vector.extract_strided_slice %86 {offsets = [0, 0], sizes = [8, 32], strides = [1, 1]} : vector<16x32xf32> to vector<8x32xf32>
    %88 = vector.extract_strided_slice %86 {offsets = [8, 0], sizes = [8, 32], strides = [1, 1]} : vector<16x32xf32> to vector<8x32xf32>
    %cst_25 = arith.constant dense<0.000000e+00> : vector<8x96xf32>
    %89 = tpu.matmul %87, %4, %cst_25 {dimension_numbers = #tpu.dot_dimension_numbers<[1], [0], [0], [1], [0, 0, 1, 1], [], []>} : vector<8x32xf32>, vector<32x96xf32>, vector<8x96xf32> -> vector<8x96xf32>
    %cst_26 = arith.constant dense<0.000000e+00> : vector<8x96xf32>
    %90 = tpu.matmul %88, %5, %cst_26 {dimension_numbers = #tpu.dot_dimension_numbers<[1], [0], [0], [1], [0, 0, 1, 1], [], []>} : vector<8x32xf32>, vector<32x96xf32>, vector<8x96xf32> -> vector<8x96xf32>
    %91 = arith.addf %89, %90 : vector<8x96xf32>
    %cst_27 = arith.constant dense<0.000000e+00> : vector<8x32xf32>
    %92 = tpu.matmul %85, %6, %cst_27 {dimension_numbers = #tpu.dot_dimension_numbers<[1], [0], [0], [1], [0, 0, 1, 1], [], []>} : vector<8x32xf32>, vector<32x32xf32>, vector<8x32xf32> -> vector<8x32xf32>
    %93 = vector.extract_strided_slice %91 {offsets = [0, 0], sizes = [8, 32], strides = [1, 1]} : vector<8x96xf32> to vector<8x32xf32>
    %94 = arith.addf %93, %92 : vector<8x32xf32>
    %95 = arith.addf %94, %11 : vector<8x32xf32>
    %96 = arith.negf %95 : vector<8x32xf32>
    %97 = math.exp %96 : vector<8x32xf32>
    %cst_28 = arith.constant 1.000000e+00 : f32
    %98 = vector.broadcast %cst_28 : f32 to vector<8x32xf32>
    %99 = arith.addf %98, %97 : vector<8x32xf32>
    %100 = arith.divf %98, %99 : vector<8x32xf32>
    %101 = vector.extract_strided_slice %91 {offsets = [0, 32], sizes = [8, 32], strides = [1, 1]} : vector<8x96xf32> to vector<8x32xf32>
    %102 = arith.addf %101, %92 : vector<8x32xf32>
    %103 = arith.addf %102, %14 : vector<8x32xf32>
    %104 = arith.negf %103 : vector<8x32xf32>
    %105 = math.exp %104 : vector<8x32xf32>
    %cst_29 = arith.constant 1.000000e+00 : f32
    %106 = vector.broadcast %cst_29 : f32 to vector<8x32xf32>
    %107 = arith.addf %106, %105 : vector<8x32xf32>
    %108 = arith.divf %106, %107 : vector<8x32xf32>
    %109 = arith.mulf %108, %85 : vector<8x32xf32>
    %cst_30 = arith.constant dense<0.000000e+00> : vector<8x32xf32>
    %110 = tpu.matmul %109, %7, %cst_30 {dimension_numbers = #tpu.dot_dimension_numbers<[1], [0], [0], [1], [0, 0, 1, 1], [], []>} : vector<8x32xf32>, vector<32x32xf32>, vector<8x32xf32> -> vector<8x32xf32>
    %111 = vector.extract_strided_slice %91 {offsets = [0, 64], sizes = [8, 32], strides = [1, 1]} : vector<8x96xf32> to vector<8x32xf32>
    %112 = arith.addf %111, %110 : vector<8x32xf32>
    %113 = arith.addf %112, %17 : vector<8x32xf32>
    %114 = math.tanh %113 : vector<8x32xf32>
    %cst_31 = arith.constant 1.000000e+00 : f32
    %115 = vector.broadcast %cst_31 : f32 to vector<8x32xf32>
    %116 = arith.subf %115, %100 : vector<8x32xf32>
    %117 = arith.mulf %116, %85 : vector<8x32xf32>
    %118 = arith.mulf %100, %114 : vector<8x32xf32>
    %119 = arith.addf %117, %118 : vector<8x32xf32>
    %c0_32 = arith.constant 0 : index
    %c0_33 = arith.constant 0 : index
    %120 = vector.load %arg6[%c0_32, %c0_33] : memref<8x32xf32, #tpu.memory_space<vmem>>, vector<8x32xf32>
    tpu.vector_store %arg6[%c0_32, %c0_33], %119 {strides = array<i32>} : memref<8x32xf32, #tpu.memory_space<vmem>>, vector<8x32xf32>,
    return
  }
  func.func @transform_0(%arg0: i32) -> (i32, i32) {
    %c0_i32 = arith.constant 0 : i32
    %c0_i32_0 = arith.constant 0 : i32
    return %arg0, %c0_i32 : i32, i32
  }
  func.func @transform_1(%arg0: i32) -> (i32, i32) {
    %c0_i32 = arith.constant 0 : i32
    %c0_i32_0 = arith.constant 0 : i32
    %c0_i32_1 = arith.constant 0 : i32
    return %c0_i32, %c0_i32_0 : i32, i32
  }
  func.func @transform_2(%arg0: i32) -> (i32, i32) {
    %c0_i32 = arith.constant 0 : i32
    %c0_i32_0 = arith.constant 0 : i32
    %c0_i32_1 = arith.constant 0 : i32
    return %c0_i32, %c0_i32_0 : i32, i32
  }
  func.func @transform_3(%arg0: i32) -> (i32, i32) {
    %c0_i32 = arith.constant 0 : i32
    %c0_i32_0 = arith.constant 0 : i32
    %c0_i32_1 = arith.constant 0 : i32
    return %c0_i32, %c0_i32_0 : i32, i32
  }
  func.func @transform_4(%arg0: i32) -> (i32, i32) {
    %c0_i32 = arith.constant 0 : i32
    %c0_i32_0 = arith.constant 0 : i32
    %c0_i32_1 = arith.constant 0 : i32
    return %c0_i32, %c0_i32_0 : i32, i32
  }
  func.func @transform_5(%arg0: i32) -> (i32, i32) {
    %c0_i32 = arith.constant 0 : i32
    %c0_i32_0 = arith.constant 0 : i32
    return %arg0, %c0_i32 : i32, i32
  }
}

</mosaic_0001>

<bundles_post_ra>
// kernel: tpu_custom_call.1
= control target key start
LH: loop header
LB: loop body
LE: loop exit
PB: predicated region body
PF: predicated region fallthrough
CT: control target
= control target key end

     0   :  { %10 = vsyncpa [#allocation3], 0  ;;  %s2378_s0 = inlined_call_operand.vmem [shape: f32[16,32], index: 0, kind: input, shape index: {}]   ;;  %s2379_s1 = inlined_call_operand.vmem [shape: f32[16,8], index: 1, kind: input, shape index: {}]   ;;  %s2380_s2 = inlined_call_operand.vmem [shape: f32[64,96], index: 2, kind: input, shape index: {}]   ;;  %s2381_s3 = inlined_call_operand.vmem [shape: f32[64,32], index: 3, kind: input, shape index: {}]   ;;  %s2382_s4 = inlined_call_operand.vmem [shape: f32[1,96], index: 4, kind: input, shape index: {}]   ;;  %s2383_s5 = inlined_call_operand.hbm [shape: f32[16,32], index: 5, kind: output, shape index: {}]  }
   0x1   :  { %12 = vsyncpa [#allocation3 + $0x1], 0  ;;  %s2057_s18 = smov 0   ;;  %s2059_s19 = smov 0  }
   0x2   :  { %s2061_s20 = smov 0   ;;  %s2063_s21 = smov 0  }
   0x3 LB: > { %s2078_s22 = sadd.s32 4294967295, %s2018_s21   ;;  %s1552_s23 = sadd.s32 4294967294, %s2018_s21   ;;  %s2018_s21 = sphi %s2063_s21, %s2389_s21   ;;  %s2014_s20 = sphi %s2061_s20, %s2388_s20   ;;  %s2010_s19 = sphi %s2059_s19, %s2387_s19   ;;  %s2006_s18 = sphi %s2057_s18, %s2386_s18  }
   0x4   : > { %s2082_s24 = sadd.s32 1, %s2018_s21   ;;  %s135_s25 = sadd.s32 1, %s2014_s20 }
   0x5   : > { %s132_s26 = ssub.s32 %s2018_s21, %s2082_s24  ;;  %p145_p0 = scmp.ne.s32.totalorder %s2014_s20, %s2010_s19 }
   0x6   : > { %p133_p1 = scmp.eq.s32.totalorder %s132_s26, 0  ;;  %p146_p2 = scmp.eq.s32.totalorder %s2078_s22, 1 }
   0x7   : > { %p151_p3 = scmp.ne.s32.totalorder %s2010_s19, %s2006_s18  ;;  %p152_p4 = scmp.eq.s32.totalorder %s1552_s23, 1 }
   0x8   : > { %s2093_s27 = scalar_select %p133_p1, %s2014_s20, %s135_s25  }
   0x9   : > { %p2095_p5 = por %p146_p2, %p145_p0  ;;  %p2099_p6 = por %p152_p4, %p151_p3 }
   0xa   : > { %p1555_p7 = scmp.ge.s32.totalorder %s2018_s21, 1  ;;  %p189_p8 = scmp.lt.s32.totalorder %s2018_s21, 3 }
   0xc   : > { %p190_p9 = pnand %p1555_p7, %p189_p8 }
   0xd   : > { %p216_p10 = scmp.lt.s32.totalorder (!%p190_p9), %s2078_s22, 1  ;;  %v2109_v0 = vld [vmem:[%s2379_s1] sm:$0xff] (!%p190_p9)  ;;  %vm246_vm0 = vcmask (!%p190_p9), 64512   ;;  %v2020_v1 = vmov (!%p190_p9), 0.0|0.0   ;;  %v228_v3 = vld [vmem:[%s2380_s2 + $0x28] sm:$0xff] (!%p190_p9)  ;;  %vm2021_vm1 = vmmov (!%p190_p9), 0  }
   0xe   : > { %193 = sbr.rel (%p190_p9) target bundleno = 3166 (0xc5e), region = 40  ;;  %1658 = vmatprep.mubr.msk.f32.mxu0 (!%p190_p9), %vm246_vm0, %v2109_v0  ;;  %1803 = vmatprep.subr.bf16.mxu1 (!%p190_p9), %v2020_v1  ;;  %v227_v2 = vld [vmem:[%s2380_s2 + $0x20] sm:$0xff] (!%p190_p9)  ;;  %v2022_v4 = vmov (!%p190_p9), 0.0   ;;  %v232_v6 = vld [vmem:[%s2381_s3 + $0x8] sm:$0xff] (!%p190_p9)  ;;  %v229_v8 = vld [vmem:[%s2380_s2 + $0x30] sm:$0xff] (!%p190_p9)  ;;  %vm328_vm2 = vcmask (!%p190_p9), 261120  }
   0xf   : > { %1669 = vmatprep.mubr.msk.f32.mxu1 (!%p190_p9), %vm2021_vm1, %v2022_v4  ;;  %v231_v5 = vld [vmem:[%s2381_s3] sm:$0xff] (!%p190_p9)  ;;  %v2129_v7 = vpack.c.bf16 (!%p190_p9), %v228_v3, %v227_v2  ;;  %v230_v9 = vld [vmem:[%s2380_s2 + $0x38] sm:$0xff] (!%p190_p9)  ;;  %v2146_v11 = vld [vmem:[%s2379_s1 + $0x8] sm:$0xff] (!%p190_p9)  ;;  %s2023_s6 = smov (!%p190_p9), 32   ;;  %s2024_s17 = smov (!%p190_p9), 96  }
  0x10   : > { %v2148_v12 = vpack.c.bf16 (!%p190_p9), %v232_v6, %v231_v5  ;;  %v233_v13 = vld [vmem:[%s2381_s3 + $0x10] sm:$0xff] (!%p190_p9)  ;;  %v234_v14 = vld [vmem:[%s2381_s3 + $0x18] sm:$0xff] (!%p190_p9)  ;;  %v2158_v15 = vpack.c.bf16 (!%p190_p9), %v230_v9, %v229_v8  ;;  %v223_v17 = vld [vmem:[%s2380_s2] sm:$0xff] (!%p190_p9)  ;;  %s2025_s23 = smov (!%p190_p9), 64   ;;  %s213_s25 = sand.u32 (!%p190_p9), 1, %s2010_s19  }
  0x11   : > { %1805 = vmatpush3.bf16.msra.mxu1 (!%p190_p9), %v2129_v7  ;;  %v2165_v16 = vpack.c.bf16 (!%p190_p9), %v234_v14, %v233_v13  ;;  %v224_v18 = vld [vmem:[%s2380_s2 + $0x8] sm:$0xff] (!%p190_p9)  ;;  %v225_v20 = vld [vmem:[%s2380_s2 + $0x10] sm:$0xff] (!%p190_p9)  ;;  %v226_v21 = vld [vmem:[%s2380_s2 + $0x18] sm:$0xff] (!%p190_p9)  ;;  %s1556_s26 = sshll.u32 (!%p190_p9), %s213_s25, 3  ;;  %s1584_s30 = sshll.u32 (!%p190_p9), %s2078_s22, 7 }
  0x12   : > { %1806 = vmatprep.subr.bf16.mxu1 (!%p190_p9), %v2020_v1  ;;  %v2184_v19 = vpack.c.bf16 (!%p190_p9), %v224_v18, %v223_v17  ;;  %v2194_v24 = vpack.c.bf16 (!%p190_p9), %v226_v21, %v225_v20  ;;  %v235_v27 = vld [vmem:[%s2381_s3 + $0x20] sm:$0xff] (!%p190_p9)  ;;  %v236_v28 = vld [vmem:[%s2381_s3 + $0x28] sm:$0xff] (!%p190_p9)  ;;  %v237_v29 = vld [vmem:[%s2381_s3 + $0x30] sm:$0xff] (!%p190_p9)  ;;  %s1480_s11 = scalar_lea.sflag (!%p190_p9), [#allocation3], %s213_s25  ;;  %s2026_s12 = smov (!%p190_p9), [#allocation2]  }
  0x13   : > { %v2215_v30 = vpack.c.bf16 (!%p190_p9), %v236_v28, %v235_v27  ;;  %v238_v31 = vld [vmem:[%s2381_s3 + $0x38] sm:$0xff] (!%p190_p9)  ;;  %v2229_v34 = vld [vmem:[%s2382_s4] ss:$0 sm:$0xff] (!%p190_p9)  ;;  %s1960_s13 = sshll.u32 (!%p190_p9), %s2026_s12, 4  ;;  %s1961_s13 = int_to_ptr.vmem [resolvable:$false] %s1960_s13 }
  0x14   : > { %v2221_v32 = vpack.c.bf16 (!%p190_p9), %v238_v31, %v237_v29  ;;  %s1962_s14 = scalar_lea.vmem (!%p190_p9), %s1961_s13, 256 }
  0x15   : > { %s217_s7 = scalar_select %p216_p10, %s2078_s22, 1  ;;  %1808 = vmatpush3.bf16.msra.mxu1 %v2158_v15 }
  0x16   : > { %1809 = vmatprep.subr.bf16.mxu1 %v2020_v1 }
  0x17   : > { %s1557_s16 = sshll.u32 %s217_s7, 3  ;;  %s2335_s7 = scalar_lea.hbm %s2383_s5, %s1584_s30 }
  0x18   : > { %s219_s8 = scalar_lea.vmem %s2378_s0, %s1557_s16 }
  0x19   : > { %v2141_v10 = vld [vmem:[%s219_s8] sm:$0xff] }
  0x1a   : > { %1656 = vmatprep.subr.mxu0 %v2141_v10 }
  0x1b   : > { %1657 = vmatpush3.msra.mxu0 %v2141_v10 }
  0x1c   : > { %1659 = vmatmul.mubr.msk.f32.vlgmr.msra.gmra.mrb[0].mxu0 %vm246_vm0, %v2146_v11  ;;  %1815 = vmatprep.subr.bf16.mxu0 %v2020_v1 }
  0x1d   : > { %1817 = vmatpush3.bf16.msra.mxu0 %v2148_v12  ;;  %1691 = vmatprep.mubr.msk.f32.mxu0 %vm2021_vm1, %v2022_v4 }
  0x1e   : > { %1818 = vmatprep.subr.bf16.mxu0 %v2020_v1 }
  0x21   : > { %1820 = vmatpush3.bf16.msra.mxu0 %v2165_v16 }
  0x22   : > { %1821 = vmatprep.subr.bf16.mxu0 %v2020_v1 }
  0x24   : > { %1692 = vmatmul.mubr.msk.f32.vlgmr.msra.gmra.mrb[2].mxu0 %vm328_vm2, %v2141_v10 }
  0x25   : > { %1702 = vmatprep.mubr.msk.f32.mxu0 %vm2021_vm1, %v2022_v4  ;;  %1823 = vmatpush3.bf16.msra.mxu0 %v2215_v30 }
  0x26   : > { %1824 = vmatprep.subr.bf16.mxu0 %v2020_v1 }
  0x29   : > { %1826 = vmatpush3.bf16.msra.mxu0 %v2221_v32 }
  0x2a   : > { %1827 = vmatprep.subr.bf16.mxu0 %v2020_v1 }
  0xef   : > { %v1660_v22 = vpop.f32.mrb[0].mxu0 }
  0xf0   : > { %v319_v23 = vpop.f32.mrb[1].mxu0  ;;  %1670 = vmatmul.mubr.msk.f32.vlgmr.msra.gmra.mrb[0].mxu1 %vm328_vm2, %v1660_v22 }
  0xf1   : > { %1811 = vmatpush3.bf16.msra.mxu1 %v2184_v19  ;;  %1680 = vmatprep.mubr.msk.f32.mxu1 %vm2021_vm1, %v2022_v4 }
  0xf2   : > { %1812 = vmatprep.subr.bf16.mxu1 %v2020_v1 }
  0xf5   : > { %1814 = vmatpush3.bf16.msra.mxu1 %v2194_v24 }
  0xf7   : > { %v544_v25 = vpop.f32.mrb[2].mxu0 }
  0xf8   : > { %1681 = vmatmul.mubr.msk.f32.vlgmr.msra.gmra.mrb[0].mxu1 %vm328_vm2, %v319_v23  ;;  %v1693_v26 = vpop.f32.mrb[3].mxu0  ;;  %557 = vrot.lane.b32.xlu0 %v544_v25, %s2023_s6 }
  0xf9   : > { %1707 = vmatprep.mubr.msk.f32.mxu1 %vm246_vm0, %v2109_v0 }
  0xfc   : > { %568 = vrot.lane.b32.xlu0 %v2141_v10, %s2023_s6 }
 0x16a   : > { %v558_v33 = vpop.permute.xlu0 %557 }
 0x16e   : > { %v569_v43 = vpop.permute.xlu0 %568 }
 0x1cb   : > { %v471_v35 = vpop.f32.mrb[0].mxu1 }
 0x1cc   : > { %v548_v36 = vadd.f32 %v544_v25, %v471_v35  ;;  %v560_v37 = vadd.f32 %v558_v33, %v471_v35  ;;  %v1682_v38 = vpop.f32.mrb[1].mxu1 }
 0x1ce   : > { %v561_v39 = vadd.f32 %v2229_v34, %v560_v37  ;;  %v549_v53 = vadd.f32 %v2229_v34, %v548_v36 }
 0x1d0   : > { %v1565_v40 = vmul.f32 -1.442695, %v561_v39  ;;  %v1564_v54 = vmul.f32 -1.442695, %v549_v53 }
 0x1d2   : > { %1926 = vpow2.f32 %v1565_v40 }
 0x1dc   : > { %v1927_v41 = vpop.eup %1926 }
 0x1dd   : > { %v565_v42 = vadd.f32 1.0, %v1927_v41 }
 0x1df   : > { %1928 = vrcp.f32 %v565_v42 }
 0x1e9   : > { %v1929_v44 = vpop.eup %1928 }
 0x1ea   : > { %v571_v45 = vmul.f32 %v1929_v44, %v569_v43 }
 0x1ec   : > { %573 = vrot.lane.b32.xlu1 %v571_v45, %s2024_s17 }
 0x25e   : > { %v574_v46 = vpop.permute.xlu1 %573 }
 0x25f   : > { %1703 = vmatmul.mubr.msk.f32.vlgmr.msra.gmra.mrb[4].mxu0 %vm328_vm2, %v574_v46 }
 0x260   : > { %1829 = vmatpush3.bf16.msra.mxu0 %v2129_v7  ;;  %1718 = vmatprep.mubr.msk.f32.mxu0 %vm2021_vm1, %v2022_v4 }
 0x261   : > { %1830 = vmatprep.subr.bf16.mxu0 %v2020_v1 }
 0x264   : > { %1832 = vmatpush3.bf16.msra.mxu0 %v2158_v15 }
 0x265   : > { %1833 = vmatprep.subr.bf16.mxu0 %v2020_v1 }
 0x332   : > { %v643_v47 = vpop.f32.mrb[4].mxu0 }
 0x333   : > { %648 = vrot.lane.b32.xlu1 %v643_v47, %s2025_s23  ;;  %v1704_v48 = vpop.f32.mrb[5].mxu0 }
 0x3a5   : > { %v649_v49 = vpop.permute.xlu1 %648 }
 0x3a6   : > { %v651_v50 = vadd.f32 %v649_v49, %v471_v35 }
 0x3a8   : > { %v652_v51 = vadd.f32 %v2229_v34, %v651_v50 }
 0x3aa   : > { %1930 = vtanh.f32 %v652_v51 }
 0x3ab   : > { %1932 = vpow2.f32 %v1564_v54 }
 0x3b4   : > { %v1931_v52 = vpop.eup %1930 }
 0x3b5   : > { %657 = vrot.lane.b32.xlu0 %v1931_v52, %s2025_s23  ;;  %v1933_v55 = vpop.eup %1932 }
 0x3b6   : > { %v553_v56 = vadd.f32 1.0, %v1933_v55 }
 0x3b8   : > { %1934 = vrcp.f32 %v553_v56 }
 0x3c2   : > { %v1935_v57 = vpop.eup %1934 }
 0x3c3   : > { %v654_v58 = vsub.f32 1.0, %v1935_v57 }
 0x3c5   : > { %v655_v60 = vmul.f32 %v654_v58, %v2141_v10 }
 0x427   : > { %v658_v59 = vpop.permute.xlu0 %657 }
 0x428   : > { %v660_v61 = vmul.f32 %v1935_v57, %v658_v59 }
 0x42a   : > { %v2245_v62 = vadd.f32 %v660_v61, %v655_v60 }
 0x42c   : > { %976 = vrot.lane.b32.xlu0 %v2245_v62, %s2023_s6  ;;  %1705 = vmatprep.subr.mxu1 %v2245_v62 }
 0x42d   : > { %1706 = vmatpush3.msra.mxu1 %v2245_v62 }
 0x42e   : > { %1708 = vmatmul.mubr.msk.f32.vlgmr.msra.gmra.mrb[2].mxu1 %vm246_vm0, %v2146_v11  ;;  %1839 = vmatprep.subr.bf16.mxu1 %v2020_v1 }
 0x42f   : > { %1841 = vmatpush3.bf16.msra.mxu1 %v2148_v12  ;;  %1740 = vmatprep.mubr.msk.f32.mxu1 %vm2021_vm1, %v2022_v4 }
 0x430   : > { %1842 = vmatprep.subr.bf16.mxu1 %v2020_v1 }
 0x433   : > { %1844 = vmatpush3.bf16.msra.mxu1 %v2165_v16 }
 0x434   : > { %1845 = vmatprep.subr.bf16.mxu1 %v2020_v1 }
 0x436   : > { %1741 = vmatmul.mubr.msk.f32.vlgmr.msra.gmra.mrb[4].mxu1 %vm328_vm2, %v2245_v62 }
 0x437   : > { %1847 = vmatpush3.bf16.msra.mxu1 %v2215_v30  ;;  %1751 = vmatprep.mubr.msk.f32.mxu1 %vm2021_vm1, %v2022_v4 }
 0x438   : > { %1848 = vmatprep.subr.bf16.mxu1 %v2020_v1 }
 0x43b   : > { %1850 = vmatpush3.bf16.msra.mxu1 %v2221_v32 }
 0x43c   : > { %1851 = vmatprep.subr.bf16.mxu1 %v2020_v1 }
 0x49e   : > { %v977_v22 = vpop.permute.xlu0 %976 }
 0x501   : > { %v1709_v63 = vpop.f32.mrb[2].mxu1 }
 0x502   : > { %v728_v2 = vpop.f32.mrb[3].mxu1  ;;  %1719 = vmatmul.mubr.msk.f32.vlgmr.msra.gmra.mrb[6].mxu0 %vm328_vm2, %v1709_v63 }
 0x503   : > { %1835 = vmatpush3.bf16.msra.mxu0 %v2184_v19  ;;  %1729 = vmatprep.mubr.msk.f32.mxu0 %vm2021_vm1, %v2022_v4 }
 0x504   : > { %1836 = vmatprep.subr.bf16.mxu0 %v2020_v1 }
 0x507   : > { %1838 = vmatpush3.bf16.msra.mxu0 %v2194_v24 }
 0x509   : > { %v952_v3 = vpop.f32.mrb[4].mxu1 }
 0x50a   : > { %965 = vrot.lane.b32.xlu1 %v952_v3, %s2023_s6  ;;  %1730 = vmatmul.mubr.msk.f32.vlgmr.msra.gmra.mrb[6].mxu0 %vm328_vm2, %v728_v2  ;;  %v1742_v5 = vpop.f32.mrb[5].mxu1 }
 0x50b   : > { %1756 = vmatprep.mubr.msk.f32.mxu0 %vm246_vm0, %v2109_v0 }
 0x57c   : > { %v966_v6 = vpop.permute.xlu1 %965 }
 0x5dd   : > { %v879_v8 = vpop.f32.mrb[6].mxu0 }
 0x5de   : > { %v956_v9 = vadd.f32 %v952_v3, %v879_v8  ;;  %v968_v10 = vadd.f32 %v966_v6, %v879_v8  ;;  %v1731_v13 = vpop.f32.mrb[7].mxu0 }
 0x5e0   : > { %v969_v14 = vadd.f32 %v2229_v34, %v968_v10 }
 0x5e2   : > { %v1573_v17 = vmul.f32 -1.442695, %v969_v14 }
 0x5e4   : > { %1936 = vpow2.f32 %v1573_v17 }
 0x5ee   : > { %v1937_v18 = vpop.eup %1936 }
 0x5ef   : > { %v973_v20 = vadd.f32 1.0, %v1937_v18 }
 0x5f1   : > { %1938 = vrcp.f32 %v973_v20 }
 0x5fb   : > { %v1939_v21 = vpop.eup %1938 }
 0x5fc   : > { %v979_v23 = vmul.f32 %v1939_v21, %v977_v22 }
 0x5fe   : > { %981 = vrot.lane.b32.xlu1 %v979_v23, %s2024_s17 }
 0x670   : > { %v982_v25 = vpop.permute.xlu1 %981 }
 0x671   : > { %1752 = vmatmul.mubr.msk.f32.vlgmr.msra.gmra.mrb[6].mxu1 %vm328_vm2, %v982_v25 }
 0x672   : > { %1853 = vmatpush3.bf16.msra.mxu1 %v2129_v7  ;;  %1767 = vmatprep.mubr.msk.f32.mxu1 %vm2021_vm1, %v2022_v4  ;;  %v957_v7 = vadd.f32 %v2229_v34, %v956_v9 }
 0x673   : > { %1854 = vmatprep.subr.bf16.mxu1 %v2020_v1 }
 0x674   : > { %v1572_v33 = vmul.f32 -1.442695, %v957_v7 }
 0x676   : > { %1856 = vmatpush3.bf16.msra.mxu1 %v2158_v15 }
 0x677   : > { %1857 = vmatprep.subr.bf16.mxu1 %v2020_v1 }
 0x744   : > { %v1051_v0 = vpop.f32.mrb[6].mxu1 }
 0x745   : > { %1056 = vrot.lane.b32.xlu0 %v1051_v0, %s2025_s23  ;;  %v1753_v26 = vpop.f32.mrb[7].mxu1 }
 0x7b7   : > { %v1057_v27 = vpop.permute.xlu0 %1056 }
 0x7b8   : > { %v1059_v28 = vadd.f32 %v1057_v27, %v879_v8 }
 0x7ba   : > { %v1060_v29 = vadd.f32 %v2229_v34, %v1059_v28 }
 0x7bc   : > { %1940 = vtanh.f32 %v1060_v29 }
 0x7bd   : > { %1942 = vpow2.f32 %v1572_v33 }
 0x7c6   : > { %v1941_v31 = vpop.eup %1940 }
 0x7c7   : > { %1065 = vrot.lane.b32.xlu1 %v1941_v31, %s2025_s23  ;;  %v1943_v35 = vpop.eup %1942 }
 0x7c8   : > { %v961_v15 = vadd.f32 1.0, %v1943_v35 }
 0x7ca   : > { %1944 = vrcp.f32 %v961_v15 }
 0x7d4   : > { %v1945_v36 = vpop.eup %1944 }
 0x7d5   : > { %v1062_v37 = vsub.f32 1.0, %v1945_v36 }
 0x7d7   : > { %v1063_v39 = vmul.f32 %v1062_v37, %v2245_v62 }
 0x839   : > { %v1066_v38 = vpop.permute.xlu1 %1065 }
 0x83a   : > { %v1068_v40 = vmul.f32 %v1945_v36, %v1066_v38 }
 0x83c   : > { %v2292_v41 = vadd.f32 %v1068_v40, %v1063_v39 }
 0x83e   : > { %1384 = vrot.lane.b32.xlu1 %v2292_v41, %s2023_s6  ;;  %1754 = vmatprep.subr.mxu0 %v2292_v41 }
 0x83f   : > { %1755 = vmatpush3.msra.mxu0 %v2292_v41 }
 0x840   : > { %1757 = vmatmul.mubr.msk.f32.vlgmr.msra.gmra.mrb[8].mxu0 %vm246_vm0, %v2146_v11  ;;  %1863 = vmatprep.subr.bf16.mxu0 %v2020_v1 }
 0x841   : > { %1865 = vmatpush3.bf16.msra.mxu0 %v2148_v12  ;;  %1789 = vmatprep.mubr.msk.f32.mxu0 %vm2021_vm1, %v2022_v4 }
 0x842   : > { %1866 = vmatprep.subr.bf16.mxu0 %v2020_v1 }
 0x845   : > { %1868 = vmatpush3.bf16.msra.mxu0 %v2165_v16 }
 0x846   : > { %1869 = vmatprep.subr.bf16.mxu0 %v2020_v1 }
 0x848   : > { %1790 = vmatmul.mubr.msk.f32.vlgmr.msra.gmra.mrb[10].mxu0 %vm328_vm2, %v2292_v41 }
 0x849   : > { %1871 = vmatpush3.bf16.msra.mxu0 %v2215_v30  ;;  %1800 = vmatprep.mubr.msk.f32.mxu0 %vm2021_vm1, %v2022_v4 }
 0x84a   : > { %1872 = vmatprep.subr.bf16.mxu0 %v2020_v1 }
 0x84d   : > { %1874 = vmatpush3.bf16.msra.mxu0 %v2221_v32 }
 0x913   : > { %v1758_v11 = vpop.f32.mrb[8].mxu0 }
 0x914   : > { %1768 = vmatmul.mubr.msk.f32.vlgmr.msra.gmra.mrb[8].mxu1 %vm328_vm2, %v1758_v11  ;;  %v1136_v12 = vpop.f32.mrb[9].mxu0 }
 0x915   : > { %1859 = vmatpush3.bf16.msra.mxu1 %v2184_v19  ;;  %1778 = vmatprep.mubr.msk.f32.mxu1 %vm2021_vm1, %v2022_v4 }
 0x916   : > { %1860 = vmatprep.subr.bf16.mxu1 %v2020_v1 }
 0x919   : > { %1862 = vmatpush3.bf16.msra.mxu1 %v2194_v24  ;;  %v1385_v24 = vpop.permute.xlu1 %1384 }
 0x91b   : > { %v1360_v16 = vpop.f32.mrb[10].mxu0 }
 0x91c   : > { %1373 = vrot.lane.b32.xlu0 %v1360_v16, %s2023_s6  ;;  %1779 = vmatmul.mubr.msk.f32.vlgmr.msra.gmra.mrb[8].mxu1 %vm328_vm2, %v1136_v12  ;;  %v1791_v30 = vpop.f32.mrb[11].mxu0  ;;  %s215_s6 = scalar_lea.vmem [#allocation2], %s1556_s26 }
 0x91d   : > { %s1493_s8 = sshll.u32 %s215_s6, 4  ;;  %s2337_s8 = int_to_ptr.vmem [resolvable:$true] %s1493_s8 }
 0x91e   : > { %s1956_s22 = scalar_lea.vmem %s2337_s8, 128  ;;  %p1963_p0 = scmp.lt.s32.totalorder %s2337_s8, %s1961_s13 }
 0x91f   : > { %p1957_p11 = scmp.ne.s32.totalorder %s2337_s8, %s1956_s22  ;;  %p1964_p1 = scmp.lt.s32.totalorder %s1962_s14, %s1956_s22 }
 0x921   : > { %p1958_p12 = pnand %p1957_p11, %p2095_p5  ;;  %p1965_p2 = por %p1964_p1, %p1963_p0 }
 0x923   : > { %p1959_p13 = pneg %p1958_p12 }
 0x925   : > { %p1966_p3 = pnand %p1965_p2, %p1959_p13 }
 0x98e   : > { %v1374_v32 = vpop.permute.xlu0 %1373 }
 0x9ef   : > { %v1287_v42 = vpop.f32.mrb[8].mxu1 }
 0x9f0   : > { %v1364_v43 = vadd.f32 %v1360_v16, %v1287_v42  ;;  %v1376_v44 = vadd.f32 %v1374_v32, %v1287_v42  ;;  %v1780_v45 = vpop.f32.mrb[9].mxu1 }
 0x9f2   : > { %v1377_v19 = vadd.f32 %v2229_v34, %v1376_v44  ;;  %v1365_v56 = vadd.f32 %v2229_v34, %v1364_v43 }
 0x9f4   : > { %v1581_v46 = vmul.f32 -1.442695, %v1377_v19  ;;  %v1580_v57 = vmul.f32 -1.442695, %v1365_v56 }
 0x9f6   : > { %1946 = vpow2.f32 %v1581_v46 }
 0xa00   : > { %v1947_v4 = vpop.eup %1946 }
 0xa01   : > { %v1381_v47 = vadd.f32 1.0, %v1947_v4 }
 0xa03   : > { %1948 = vrcp.f32 %v1381_v47 }
 0xa0d   : > { %v1949_v1 = vpop.eup %1948 }
 0xa0e   : > { %v1387_v48 = vmul.f32 %v1949_v1, %v1385_v24 }
 0xa10   : > { %1389 = vrot.lane.b32.xlu0 %v1387_v48, %s2024_s17 }
 0xa82   : > { %v1390_v49 = vpop.permute.xlu0 %1389 }
 0xa83   : > { %1801 = vmatmul.mubr.msk.f32.vlgmr.msra.gmra.mrb[12].mxu0 %vm328_vm2, %v1390_v49 }
 0xb56   : > { %v1459_v50 = vpop.f32.mrb[12].mxu0 }
 0xb57   : > { %1464 = vrot.lane.b32.xlu1 %v1459_v50, %s2025_s23  ;;  %v1802_v51 = vpop.f32.mrb[13].mxu0 }
 0xbc9   : > { %v1465_v52 = vpop.permute.xlu1 %1464 }
 0xbca   : > { %v1467_v53 = vadd.f32 %v1465_v52, %v1287_v42 }
 0xbcc   : > { %v1468_v54 = vadd.f32 %v2229_v34, %v1467_v53 }
 0xbce   : > { %1950 = vtanh.f32 %v1468_v54 }
 0xbcf   : > { %1952 = vpow2.f32 %v1580_v57 }
 0xbd8   : > { %v1951_v55 = vpop.eup %1950 }
 0xbd9   : > { %1473 = vrot.lane.b32.xlu0 %v1951_v55, %s2025_s23  ;;  %v1953_v58 = vpop.eup %1952 }
 0xbda   : > { %v1369_v59 = vadd.f32 1.0, %v1953_v58 }
 0xbdc   : > { %1954 = vrcp.f32 %v1369_v59 }
 0xbe6   : > { %v1955_v60 = vpop.eup %1954 }
 0xbe7   : > { %v1470_v61 = vsub.f32 1.0, %v1955_v60 }
 0xbe9   : > { %v1471_v63 = vmul.f32 %v1470_v61, %v2292_v41 }
 0xc4b   : > { %v1474_v62 = vpop.permute.xlu0 %1473 }
 0xc4c   : > { %v1476_v2 = vmul.f32 %v1955_v60, %v1474_v62 }
 0xc4e   : > { %v1477_v3 = vadd.f32 %v1476_v2, %v1471_v63 }
 0xc50   : > { %1478 = vst.msk [vmem:[%s215_s6] sm:$0xff] %vm328_vm2, %v1477_v3 }
 0xc51   : > { %1969 = shalt.err (!%p1966_p3)
}
 0xc52   : > { %s1970_s15 = scalar_lea.hbm %s2335_s7, 128  ;;  %s1974_s23 = scalar_lea.hbm %s2383_s5, 256 }
 0xc53   : > { %p1971_p4 = scmp.ne.s32.totalorder %s2335_s7, %s1970_s15  ;;  %p1975_p9 = scmp.lt.u32.totalorder %s2335_s7, %s2383_s5 }
 0xc54   : > { %p1976_p10 = scmp.lt.u32.totalorder %s1974_s23, %s1970_s15  ;;  %p1978_p12 = scmp.lt.u32.totalorder %s1970_s15, %s2335_s7 }
 0xc55   : > { %p1972_p7 = pnand %p1971_p4, %p2095_p5 }
 0xc56   : > { %p1977_p11 = por %p1976_p10, %p1975_p9 }
 0xc57   : > { %p1973_p8 = pneg %p1972_p7 }
 0xc58   : > { %p1979_p13 = por %p1978_p12, %p1977_p11 }
 0xc5a   : > { %p1980_p0 = pnand %p1979_p13, %p1973_p8 }
 0xc5c   : > { %1983 = shalt.err (!%p1980_p0)
}
 0xc5d   : > { %1881 = dma.vmem_to_hbm [thread:$0]  (%p2095_p5), %s2337_s8, 128, %s2335_s7, %s1480_s11  }
 0xc5e PF: > { %p1887_p1 = scmp.ge.s32.totalorder %s2018_s21, 2  ;;  %s1505_s30 = sand.u32 1, %s2006_s18  }
 0xc5f   : > { %s1506_s6 = scalar_lea.sflag [#allocation3], %s1505_s30 }
 0xc60   : > { %p1884_p2 = pnand %p1887_p1, %p2099_p6 }
 0xc62   : > { %2001 = dma.done.wait (!%p1884_p2), %s1506_s6, 128  }
 0xc63   : > { %2003 = vsyncadd (!%p1884_p2), %s1506_s6, 4294967168  ;;  %p15_p3 = scmp.ge.s32.totalorder %s2082_s24, 4   ;;  %s2386_s18 = smov %s2010_s19 }
 0xc64   : > { %s2387_s19 = smov %s2014_s20  ;;  %s2388_s20 = smov %s2093_s27 }
 0xc65   : > { %s2389_s21 = smov %s2082_s24  ;;  %17 = sbr.rel (!%p15_p3) target bundleno = 3 (0x3), region = 75 }
 0xc6c   :  { %1511 = vsyncpa [#allocation3], 1 }
 0xc6d   :  { %1513 = vsyncpa [#allocation3 + $0x1], 1 }

</bundles_post_ra>
